<compile_context>
chip_gen: v5e
topology: v5e:2x2
jax: 0.10.0
libtpu: 0.0.40
codegen_flags: <defaults>
</compile_context>

<pallas_src>
import functools

import jax
import jax.numpy as jnp
from jax.experimental import pallas as pl
from jax.experimental.pallas import tpu as pltpu

_LANE = 128          # lane width: last-dim / MXU alignment
_SUBLANE = 16        # minimum batch-tile granularity (covers f32 & bf16 packing)
_MAX_TILE_B = 256    # fills the 256-wide MXU on v6e/v7x; relieves vst slot on v5e


def _round_up(x, m):
    return (x + m - 1) // m * m


def _vmem_limits():
    """(sizing budget, scoped vmem_limit_bytes) per TPU generation."""
    try:
        cap = pltpu.get_tpu_info().vmem_capacity_bytes
    except Exception:  # no TPU info available -> assume the smallest (v7x-like)
        cap = 64 * 1024 * 1024
    if cap >= 100 * 1024 * 1024:      # v5e / v6e: 128 MiB physical VMEM
        return 80 * 1024 * 1024, 100 * 1024 * 1024
    # v7x: 64 MiB physical per TensorCore — stay under it with headroom for
    # compiler-internal scratch.
    return 40 * 1024 * 1024, 52 * 1024 * 1024


def _pick_tile_b(b_sub, in_p, hid_p, out_p, x_bytes, w_bytes, out_bytes,
                 budget, single_buffer_weights):
    """Largest MXU-friendly batch tile whose working set fits the VMEM budget."""
    wbuf = 1 if single_buffer_weights else 2
    resident = wbuf * ((hid_p * in_p + out_p * hid_p) * w_bytes
                       + (hid_p + out_p) * 4)
    if resident > budget:
        # TODO(synk): K/N-split reduction-grid fallback (stream weight blocks).
        raise ValueError(
            "TwoLinear Pallas kernel: VMEM-resident weights "
            f"({resident} bytes) exceed the VMEM budget ({budget} bytes); "
            "a K-split reduction grid is not implemented yet.")
    # Per batch-row cost: double-buffered x / out tiles + f32 intermediates
    # (h, y) + the bf16 copy of h fed to the second matmul.
    per_row = (2 * (in_p * x_bytes + out_p * out_bytes)
               + (hid_p + out_p) * 4 + hid_p * w_bytes)
    tile = max((budget - resident) // per_row, _SUBLANE)
    # Cap: MXU-sized, and >=2 grid steps when the batch permits (megacore
    # sharding on v7x + DMA/compute overlap everywhere).
    tile = min(tile, _MAX_TILE_B, max(b_sub // 2, _SUBLANE))
    if tile >= _LANE:
        tile = (tile // _LANE) * _LANE       # dense MXU passes / (8,128) tiles
    else:
        tile = (tile // _SUBLANE) * _SUBLANE
    return max(tile, _SUBLANE)


def two_linear_kernel(x_ref, w1_ref, b1_ref, w2_ref, b2_ref, o_ref):
    """One batch tile of: dropout(p=0)((x @ W1^T + b1) @ W2^T + b2).

    Weight refs arrive pre-transposed ([in_p, hid_p] / [hid_p, out_p]) so both
    matmuls run in the MXU's natural NN orientation (no in-kernel re-layout).
    """
    x = x_ref[...].astype(w1_ref.dtype)          # VPU cast (f32 -> compute dtype)
    h = jnp.dot(x, w1_ref[...], preferred_element_type=jnp.float32)
    h = h + b1_ref[...]                          # f32 bias add, [1, hid] broadcast
    # bf16 path downcasts h before the second matmul (MXU full rate); f32 acc.
    y = jnp.dot(h.astype(w2_ref.dtype), w2_ref[...],
                preferred_element_type=jnp.float32)
    y = y + b2_ref[...]                          # f32 bias add, [1, out]
    o_ref[...] = y.astype(o_ref.dtype)           # Dropout(p=0) == identity


@functools.partial(jax.jit,
                   static_argnames=("compute_dtype", "single_buffer_weights"))
def _two_linear_impl(x, w1, b1, w2, b2, *, compute_dtype, single_buffer_weights):
    B, in_size = x.shape
    hid_size = w1.shape[0]
    out_size = w2.shape[0]

    in_p = _round_up(in_size, _LANE)
    hid_p = _round_up(hid_size, _LANE)
    out_p = _round_up(out_size, _LANE)

    budget, vmem_limit = _vmem_limits()
    w_bytes = jnp.dtype(compute_dtype).itemsize
    x_bytes = jnp.dtype(x.dtype).itemsize
    tile_b = _pick_tile_b(_round_up(B, _SUBLANE), in_p, hid_p, out_p,
                          x_bytes, w_bytes, x_bytes, budget,
                          single_buffer_weights)
    b_pad = _round_up(B, tile_b)

    # One-time pad / transpose / cast (exact: padded rows/cols are zero and the
    # padded output columns are sliced off).  x keeps its input dtype — the
    # kernel casts it on the VPU, halving x HBM traffic vs a wrapper pre-cast.
    xp = jnp.pad(x, ((0, b_pad - B), (0, in_p - in_size)))
    w1p = jnp.pad(w1.T, ((0, in_p - in_size), (0, hid_p - hid_size))
                  ).astype(compute_dtype)
    w2p = jnp.pad(w2.T, ((0, hid_p - hid_size), (0, out_p - out_size))
                  ).astype(compute_dtype)
    b1p = jnp.pad(b1, (0, hid_p - hid_size)).astype(jnp.float32).reshape(1, hid_p)
    b2p = jnp.pad(b2, (0, out_p - out_size)).astype(jnp.float32).reshape(1, out_p)

    # Grid-invariant operands: constant index_map; single-buffer when supported.
    weight_kwargs = (
        dict(pipeline_mode=pl.Buffered(1)) if single_buffer_weights else {})

    cost = pl.CostEstimate(
        flops=2 * b_pad * (in_p * hid_p + hid_p * out_p),
        transcendentals=0,
        bytes_accessed=(xp.size * x_bytes + w1p.size * w_bytes
                        + w2p.size * w_bytes + (b1p.size + b2p.size) * 4
                        + b_pad * out_p * x_bytes),
    )

    out = pl.pallas_call(
        two_linear_kernel,
        out_shape=jax.ShapeDtypeStruct((b_pad, out_p), x.dtype),
        grid=(b_pad // tile_b,),
        in_specs=[
            pl.BlockSpec((tile_b, in_p), lambda i: (i, 0)),          # x (pipelined)
            pl.BlockSpec((in_p, hid_p), lambda i: (0, 0), **weight_kwargs),   # W1
            pl.BlockSpec((1, hid_p), lambda i: (0, 0), **weight_kwargs),      # b1
            pl.BlockSpec((hid_p, out_p), lambda i: (0, 0), **weight_kwargs),  # W2
            pl.BlockSpec((1, out_p), lambda i: (0, 0), **weight_kwargs),      # b2
        ],
        out_specs=pl.BlockSpec((tile_b, out_p), lambda i: (i, 0)),
        compiler_params=pltpu.CompilerParams(
            dimension_semantics=("parallel",),   # shard batch tiles across TCs
            vmem_limit_bytes=vmem_limit,
        ),
        cost_estimate=cost,
    )(xp, w1p, b1p, w2p, b2p)
    # NOTE: for 128-aligned model dims this slice is a no-op; otherwise it is one
    # extra HBM pass over the (lane-dense) padded output — a deliberate trade
    # against masked vst stores inside the kernel.
    return out[:B, :out_size]


_SINGLE_BUFFER_OK = hasattr(pl, "Buffered")


def two_linear(x, w1, b1, w2, b2, *, compute_dtype=jnp.bfloat16):
    """dropout(p=0)(linear2(linear(x))).  x: [B, in]; weights in PyTorch [out, in] layout."""
    global _SINGLE_BUFFER_OK
    if _SINGLE_BUFFER_OK:
        try:
            return _two_linear_impl(x, w1, b1, w2, b2,
                                    compute_dtype=compute_dtype,
                                    single_buffer_weights=True)
        except Exception:
            # pipeline_mode=pl.Buffered(1) not supported on this jax build —
            # fall back to default double-buffered weights (still correct).
            _SINGLE_BUFFER_OK = False
    return _two_linear_impl(x, w1, b1, w2, b2,
                            compute_dtype=compute_dtype,
                            single_buffer_weights=False)


def _init_linear_params(key, in_features, out_features, dtype=jnp.float32):
    """Deterministic init mimicking PyTorch nn.Linear (uniform +/- 1/sqrt(in))."""
    kw, kb = jax.random.split(key)
    bound = 1.0 / (in_features ** 0.5)
    w = jax.random.uniform(kw, (out_features, in_features), dtype,
                           minval=-bound, maxval=bound)
    b = jax.random.uniform(kb, (out_features,), dtype,
                           minval=-bound, maxval=bound)
    return w, b


if __name__ == "__main__":
    # Small shapes consistent with the module's forward: x [B, input_size].
    batch, input_size, hidden_size, output_size = 8, 32, 64, 16

    key = jax.random.PRNGKey(0)
    kx, k1, k2 = jax.random.split(key, 3)

    x = jax.random.normal(kx, (batch, input_size), jnp.float32)
    w1, b1 = _init_linear_params(k1, input_size, hidden_size)
    w2, b2 = _init_linear_params(k2, hidden_size, output_size)

    # Pure-JAX reference of the same forward pass (dropout p=0 is identity).
    ref = (x @ w1.T + b1) @ w2.T + b2

    # Exact-precision path.
    out_f32 = jax.block_until_ready(
        two_linear(x, w1, b1, w2, b2, compute_dtype=jnp.float32))
    assert out_f32.shape == (batch, output_size)
    assert jnp.allclose(out_f32, ref, atol=1e-5, rtol=1e-5)

    # bf16-operand path (MXU full rate, f32 accumulate) — looser tolerance.
    out_bf16 = jax.block_until_ready(
        two_linear(x, w1, b1, w2, b2, compute_dtype=jnp.bfloat16))
    assert out_bf16.shape == (batch, output_size)
    assert jnp.allclose(out_bf16, ref, atol=5e-2, rtol=5e-2)

    print("KERNEL_OK")
</pallas_src>

<mosaic_0001>
module attributes {stable_mosaic.version = 11 : i64} {
  func.func @two_linear_kernel(%arg0: i32, %arg1: memref<16x128xf32, #tpu.memory_space<vmem>>, %arg2: memref<128x128xf32, #tpu.memory_space<vmem>>, %arg3: memref<1x128xf32, #tpu.memory_space<vmem>>, %arg4: memref<128x128xf32, #tpu.memory_space<vmem>>, %arg5: memref<1x128xf32, #tpu.memory_space<vmem>>, %arg6: memref<16x128xf32, #tpu.memory_space<vmem>>) attributes {dimension_semantics = [#tpu.dimension_semantics<parallel>], iteration_bounds = array<i64: 1>, scalar_prefetch = 0 : i64, scratch_operands = 0 : i64, tpu.core_type = #tpu.core_type<tc>, window_params = [{transform_indices = @transform_0, window_bounds = array<i64: 16, 128>}, {pipeline_mode = #tpu.pipeline_mode<synchronous>, transform_indices = @transform_1, window_bounds = array<i64: 128, 128>}, {pipeline_mode = #tpu.pipeline_mode<synchronous>, transform_indices = @transform_2, window_bounds = array<i64: 1, 128>}, {pipeline_mode = #tpu.pipeline_mode<synchronous>, transform_indices = @transform_3, window_bounds = array<i64: 128, 128>}, {pipeline_mode = #tpu.pipeline_mode<synchronous>, transform_indices = @transform_4, window_bounds = array<i64: 1, 128>}, {transform_indices = @transform_5, window_bounds = array<i64: 16, 128>}]} {
    %c0 = arith.constant 0 : index
    %c0_0 = arith.constant 0 : index
    %0 = vector.load %arg1[%c0, %c0_0] : memref<16x128xf32, #tpu.memory_space<vmem>>, vector<16x128xf32>
    %c0_1 = arith.constant 0 : index
    %c0_2 = arith.constant 0 : index
    %1 = vector.load %arg2[%c0_1, %c0_2] : memref<128x128xf32, #tpu.memory_space<vmem>>, vector<128x128xf32>
    %cst = arith.constant dense<0.000000e+00> : vector<16x128xf32>
    %2 = tpu.matmul %0, %1, %cst {dimension_numbers = #tpu.dot_dimension_numbers<[1], [0], [0], [1], [0, 0, 1, 1], [], []>} : vector<16x128xf32>, vector<128x128xf32>, vector<16x128xf32> -> vector<16x128xf32>
    %c0_3 = arith.constant 0 : index
    %c0_4 = arith.constant 0 : index
    %3 = vector.load %arg3[%c0_3, %c0_4] : memref<1x128xf32, #tpu.memory_space<vmem>>, vector<1x128xf32>
    %4 = vector.broadcast %3 : vector<1x128xf32> to vector<16x128xf32>
    %5 = arith.addf %2, %4 : vector<16x128xf32>
    %c0_5 = arith.constant 0 : index
    %c0_6 = arith.constant 0 : index
    %6 = vector.load %arg4[%c0_5, %c0_6] : memref<128x128xf32, #tpu.memory_space<vmem>>, vector<128x128xf32>
    %cst_7 = arith.constant dense<0.000000e+00> : vector<16x128xf32>
    %7 = tpu.matmul %5, %6, %cst_7 {dimension_numbers = #tpu.dot_dimension_numbers<[1], [0], [0], [1], [0, 0, 1, 1], [], []>} : vector<16x128xf32>, vector<128x128xf32>, vector<16x128xf32> -> vector<16x128xf32>
    %c0_8 = arith.constant 0 : index
    %c0_9 = arith.constant 0 : index
    %8 = vector.load %arg5[%c0_8, %c0_9] : memref<1x128xf32, #tpu.memory_space<vmem>>, vector<1x128xf32>
    %9 = vector.broadcast %8 : vector<1x128xf32> to vector<16x128xf32>
    %10 = arith.addf %7, %9 : vector<16x128xf32>
    %c0_10 = arith.constant 0 : index
    %c0_11 = arith.constant 0 : index
    %11 = vector.load %arg6[%c0_10, %c0_11] : memref<16x128xf32, #tpu.memory_space<vmem>>, vector<16x128xf32>
    tpu.vector_store %arg6[%c0_10, %c0_11], %10 {strides = array<i32>} : memref<16x128xf32, #tpu.memory_space<vmem>>, vector<16x128xf32>,
    return
  }
  func.func @transform_0(%arg0: i32) -> (i32, i32) {
    %c0_i32 = arith.constant 0 : i32
    %c0_i32_0 = arith.constant 0 : i32
    return %arg0, %c0_i32 : i32, i32
  }
  func.func @transform_1(%arg0: i32) -> (i32, i32) {
    %c0_i32 = arith.constant 0 : i32
    %c0_i32_0 = arith.constant 0 : i32
    %c0_i32_1 = arith.constant 0 : i32
    return %c0_i32, %c0_i32_0 : i32, i32
  }
  func.func @transform_2(%arg0: i32) -> (i32, i32) {
    %c0_i32 = arith.constant 0 : i32
    %c0_i32_0 = arith.constant 0 : i32
    %c0_i32_1 = arith.constant 0 : i32
    return %c0_i32, %c0_i32_0 : i32, i32
  }
  func.func @transform_3(%arg0: i32) -> (i32, i32) {
    %c0_i32 = arith.constant 0 : i32
    %c0_i32_0 = arith.constant 0 : i32
    %c0_i32_1 = arith.constant 0 : i32
    return %c0_i32, %c0_i32_0 : i32, i32
  }
  func.func @transform_4(%arg0: i32) -> (i32, i32) {
    %c0_i32 = arith.constant 0 : i32
    %c0_i32_0 = arith.constant 0 : i32
    %c0_i32_1 = arith.constant 0 : i32
    return %c0_i32, %c0_i32_0 : i32, i32
  }
  func.func @transform_5(%arg0: i32) -> (i32, i32) {
    %c0_i32 = arith.constant 0 : i32
    %c0_i32_0 = arith.constant 0 : i32
    return %arg0, %c0_i32 : i32, i32
  }
}

module attributes {stable_mosaic.version = 11 : i64} {
  func.func @two_linear_kernel(%arg0: i32, %arg1: memref<16x128xf32, #tpu.memory_space<vmem>>, %arg2: memref<128x128xf32, #tpu.memory_space<vmem>>, %arg3: memref<1x128xf32, #tpu.memory_space<vmem>>, %arg4: memref<128x128xf32, #tpu.memory_space<vmem>>, %arg5: memref<1x128xf32, #tpu.memory_space<vmem>>, %arg6: memref<16x128xf32, #tpu.memory_space<vmem>>) attributes {dimension_semantics = [#tpu.dimension_semantics<parallel>], iteration_bounds = array<i64: 1>, scalar_prefetch = 0 : i64, scratch_operands = 0 : i64, tpu.core_type = #tpu.core_type<tc>, window_params = [{transform_indices = @transform_0, window_bounds = array<i64: 16, 128>}, {pipeline_mode = #tpu.pipeline_mode<synchronous>, transform_indices = @transform_1, window_bounds = array<i64: 128, 128>}, {pipeline_mode = #tpu.pipeline_mode<synchronous>, transform_indices = @transform_2, window_bounds = array<i64: 1, 128>}, {pipeline_mode = #tpu.pipeline_mode<synchronous>, transform_indices = @transform_3, window_bounds = array<i64: 128, 128>}, {pipeline_mode = #tpu.pipeline_mode<synchronous>, transform_indices = @transform_4, window_bounds = array<i64: 1, 128>}, {transform_indices = @transform_5, window_bounds = array<i64: 16, 128>}]} {
    %c0 = arith.constant 0 : index
    %c0_0 = arith.constant 0 : index
    %0 = vector.load %arg1[%c0, %c0_0] : memref<16x128xf32, #tpu.memory_space<vmem>>, vector<16x128xf32>
    %c0_1 = arith.constant 0 : index
    %c0_2 = arith.constant 0 : index
    %1 = vector.load %arg2[%c0_1, %c0_2] : memref<128x128xf32, #tpu.memory_space<vmem>>, vector<128x128xf32>
    %cst = arith.constant dense<0.000000e+00> : vector<16x128xf32>
    %2 = tpu.matmul %0, %1, %cst {dimension_numbers = #tpu.dot_dimension_numbers<[1], [0], [0], [1], [0, 0, 1, 1], [], []>} : vector<16x128xf32>, vector<128x128xf32>, vector<16x128xf32> -> vector<16x128xf32>
    %c0_3 = arith.constant 0 : index
    %c0_4 = arith.constant 0 : index
    %3 = vector.load %arg3[%c0_3, %c0_4] : memref<1x128xf32, #tpu.memory_space<vmem>>, vector<1x128xf32>
    %4 = vector.broadcast %3 : vector<1x128xf32> to vector<16x128xf32>
    %5 = arith.addf %2, %4 : vector<16x128xf32>
    %c0_5 = arith.constant 0 : index
    %c0_6 = arith.constant 0 : index
    %6 = vector.load %arg4[%c0_5, %c0_6] : memref<128x128xf32, #tpu.memory_space<vmem>>, vector<128x128xf32>
    %cst_7 = arith.constant dense<0.000000e+00> : vector<16x128xf32>
    %7 = tpu.matmul %5, %6, %cst_7 {dimension_numbers = #tpu.dot_dimension_numbers<[1], [0], [0], [1], [0, 0, 1, 1], [], []>} : vector<16x128xf32>, vector<128x128xf32>, vector<16x128xf32> -> vector<16x128xf32>
    %c0_8 = arith.constant 0 : index
    %c0_9 = arith.constant 0 : index
    %8 = vector.load %arg5[%c0_8, %c0_9] : memref<1x128xf32, #tpu.memory_space<vmem>>, vector<1x128xf32>
    %9 = vector.broadcast %8 : vector<1x128xf32> to vector<16x128xf32>
    %10 = arith.addf %7, %9 : vector<16x128xf32>
    %c0_10 = arith.constant 0 : index
    %c0_11 = arith.constant 0 : index
    %11 = vector.load %arg6[%c0_10, %c0_11] : memref<16x128xf32, #tpu.memory_space<vmem>>, vector<16x128xf32>
    tpu.vector_store %arg6[%c0_10, %c0_11], %10 {strides = array<i32>} : memref<16x128xf32, #tpu.memory_space<vmem>>, vector<16x128xf32>,
    return
  }
  func.func @transform_0(%arg0: i32) -> (i32, i32) {
    %c0_i32 = arith.constant 0 : i32
    %c0_i32_0 = arith.constant 0 : i32
    return %arg0, %c0_i32 : i32, i32
  }
  func.func @transform_1(%arg0: i32) -> (i32, i32) {
    %c0_i32 = arith.constant 0 : i32
    %c0_i32_0 = arith.constant 0 : i32
    %c0_i32_1 = arith.constant 0 : i32
    return %c0_i32, %c0_i32_0 : i32, i32
  }
  func.func @transform_2(%arg0: i32) -> (i32, i32) {
    %c0_i32 = arith.constant 0 : i32
    %c0_i32_0 = arith.constant 0 : i32
    %c0_i32_1 = arith.constant 0 : i32
    return %c0_i32, %c0_i32_0 : i32, i32
  }
  func.func @transform_3(%arg0: i32) -> (i32, i32) {
    %c0_i32 = arith.constant 0 : i32
    %c0_i32_0 = arith.constant 0 : i32
    %c0_i32_1 = arith.constant 0 : i32
    return %c0_i32, %c0_i32_0 : i32, i32
  }
  func.func @transform_4(%arg0: i32) -> (i32, i32) {
    %c0_i32 = arith.constant 0 : i32
    %c0_i32_0 = arith.constant 0 : i32
    %c0_i32_1 = arith.constant 0 : i32
    return %c0_i32, %c0_i32_0 : i32, i32
  }
  func.func @transform_5(%arg0: i32) -> (i32, i32) {
    %c0_i32 = arith.constant 0 : i32
    %c0_i32_0 = arith.constant 0 : i32
    return %arg0, %c0_i32 : i32, i32
  }
}

</mosaic_0001>

<bundles_post_ra>
// kernel: _two_linear_impl.1
= control target key start
LH: loop header
LB: loop body
LE: loop exit
PB: predicated region body
PF: predicated region fallthrough
CT: control target
= control target key end

     0   :  { %s292_s1 = inlined_call_operand.vmem [shape: f32[128,128], index: 1, kind: input, shape index: {}]   ;;  %s293_s3 = inlined_call_operand.vmem [shape: f32[128,128], index: 3, kind: input, shape index: {}]   ;;  %s294_s2 = inlined_call_operand.vmem [shape: f32[1,128], index: 2, kind: input, shape index: {}]   ;;  %s295_s0 = inlined_call_operand.vmem [shape: f32[16,128], index: 0, kind: input, shape index: {}]   ;;  %s296_s4 = inlined_call_operand.vmem [shape: f32[1,128], index: 4, kind: input, shape index: {}]   ;;  %s297_s5 = inlined_call_operand.vmem [shape: f32[16,128], index: 5, kind: output, shape index: {}]  }
   0x1   :  { %v37_v0 = vld [vmem:[%s292_s1 + $0x78] sm:$0xff]  ;;  %v36_v1 = vld [vmem:[%s292_s1 + $0x70] sm:$0xff]  ;;  %v35_v2 = vld [vmem:[%s292_s1 + $0x68] sm:$0xff] }
   0x2   :  { %114 = vmatpush.msra.mxu2 %v37_v0  ;;  %42 = vmatpush.msra.mxu0 %v37_v0  ;;  %v34_v3 = vld [vmem:[%s292_s1 + $0x60] sm:$0xff]  ;;  %v33_v4 = vld [vmem:[%s292_s1 + $0x58] sm:$0xff]  ;;  %v79_v6 = vld [vmem:[%s293_s3 + $0x70] sm:$0xff] }
   0x3   :  { %v80_v5 = vld [vmem:[%s293_s3 + $0x78] sm:$0xff]  ;;  %v32_v7 = vld [vmem:[%s292_s1 + $0x50] sm:$0xff]  ;;  %v78_v8 = vld [vmem:[%s293_s3 + $0x68] sm:$0xff] }
   0x4   :  { %115 = vmatpush.msra.mxu2 %v36_v1  ;;  %43 = vmatpush.msra.mxu0 %v36_v1  ;;  %v31_v9 = vld [vmem:[%s292_s1 + $0x48] sm:$0xff]  ;;  %v77_v10 = vld [vmem:[%s293_s3 + $0x60] sm:$0xff]  ;;  %v76_v12 = vld [vmem:[%s293_s3 + $0x58] sm:$0xff] }
   0x5   :  { %130 = vmatpush.msra.mxu3 %v80_v5  ;;  %85 = vmatpush.msra.mxu1 %v80_v5  ;;  %v30_v11 = vld [vmem:[%s292_s1 + $0x40] sm:$0xff]  ;;  %v29_v13 = vld [vmem:[%s292_s1 + $0x38] sm:$0xff]  ;;  %v75_v14 = vld [vmem:[%s293_s3 + $0x50] sm:$0xff] }
   0x6   :  { %116 = vmatpush.msra.mxu2 %v35_v2  ;;  %44 = vmatpush.msra.mxu0 %v35_v2  ;;  %v28_v15 = vld [vmem:[%s292_s1 + $0x30] sm:$0xff]  ;;  %v74_v16 = vld [vmem:[%s293_s3 + $0x48] sm:$0xff]  ;;  %v73_v18 = vld [vmem:[%s293_s3 + $0x40] sm:$0xff] }
   0x7   :  { %131 = vmatpush.msra.mxu3 %v79_v6  ;;  %86 = vmatpush.msra.mxu1 %v79_v6  ;;  %v27_v17 = vld [vmem:[%s292_s1 + $0x28] sm:$0xff]  ;;  %v26_v19 = vld [vmem:[%s292_s1 + $0x20] sm:$0xff]  ;;  %v72_v20 = vld [vmem:[%s293_s3 + $0x38] sm:$0xff] }
   0x8   :  { %117 = vmatpush.msra.mxu2 %v34_v3  ;;  %45 = vmatpush.msra.mxu0 %v34_v3  ;;  %v25_v21 = vld [vmem:[%s292_s1 + $0x18] sm:$0xff]  ;;  %v71_v22 = vld [vmem:[%s293_s3 + $0x30] sm:$0xff]  ;;  %v70_v24 = vld [vmem:[%s293_s3 + $0x28] sm:$0xff] }
   0x9   :  { %132 = vmatpush.msra.mxu3 %v78_v8  ;;  %87 = vmatpush.msra.mxu1 %v78_v8  ;;  %v24_v23 = vld [vmem:[%s292_s1 + $0x10] sm:$0xff]  ;;  %v23_v25 = vld [vmem:[%s292_s1 + $0x8] sm:$0xff]  ;;  %v69_v26 = vld [vmem:[%s293_s3 + $0x20] sm:$0xff] }
   0xa   :  { %118 = vmatpush.msra.mxu2 %v33_v4  ;;  %46 = vmatpush.msra.mxu0 %v33_v4  ;;  %v22_v27 = vld [vmem:[%s292_s1] sm:$0xff]  ;;  %v21_v28 = vld [vmem:[%s295_s0 + $0x8] sm:$0xff]  ;;  %v68_v30 = vld [vmem:[%s293_s3 + $0x18] sm:$0xff] }
   0xb   :  { %133 = vmatpush.msra.mxu3 %v77_v10  ;;  %88 = vmatpush.msra.mxu1 %v77_v10  ;;  %v20_v29 = vld [vmem:[%s295_s0] sm:$0xff]  ;;  %v67_v31 = vld [vmem:[%s293_s3 + $0x10] sm:$0xff]  ;;  %v66_v32 = vld [vmem:[%s293_s3 + $0x8] sm:$0xff] }
   0xc   :  { %119 = vmatpush.msra.mxu2 %v32_v7  ;;  %47 = vmatpush.msra.mxu0 %v32_v7  ;;  %v65_v33 = vld [vmem:[%s293_s3] sm:$0xff] }
   0xd   :  { %134 = vmatpush.msra.mxu3 %v76_v12  ;;  %89 = vmatpush.msra.mxu1 %v76_v12  ;;  %v146_v34 = vld [vmem:[%s294_s2] ss:$0 sm:$0xff] }
   0xe   :  { %120 = vmatpush.msra.mxu2 %v31_v9  ;;  %48 = vmatpush.msra.mxu0 %v31_v9  ;;  %v147_v39 = vld [vmem:[%s296_s4] ss:$0 sm:$0xff] }
   0xf   :  { %135 = vmatpush.msra.mxu3 %v75_v14  ;;  %90 = vmatpush.msra.mxu1 %v75_v14 }
  0x10   :  { %121 = vmatpush.msra.mxu2 %v30_v11  ;;  %49 = vmatpush.msra.mxu0 %v30_v11 }
  0x11   :  { %136 = vmatpush.msra.mxu3 %v74_v16  ;;  %91 = vmatpush.msra.mxu1 %v74_v16 }
  0x12   :  { %122 = vmatpush.msra.mxu2 %v29_v13  ;;  %50 = vmatpush.msra.mxu0 %v29_v13 }
  0x13   :  { %137 = vmatpush.msra.mxu3 %v73_v18  ;;  %92 = vmatpush.msra.mxu1 %v73_v18 }
  0x14   :  { %123 = vmatpush.msra.mxu2 %v28_v15  ;;  %51 = vmatpush.msra.mxu0 %v28_v15 }
  0x15   :  { %138 = vmatpush.msra.mxu3 %v72_v20  ;;  %93 = vmatpush.msra.mxu1 %v72_v20 }
  0x16   :  { %124 = vmatpush.msra.mxu2 %v27_v17  ;;  %52 = vmatpush.msra.mxu0 %v27_v17 }
  0x17   :  { %139 = vmatpush.msra.mxu3 %v71_v22  ;;  %94 = vmatpush.msra.mxu1 %v71_v22 }
  0x18   :  { %125 = vmatpush.msra.mxu2 %v26_v19  ;;  %53 = vmatpush.msra.mxu0 %v26_v19 }
  0x19   :  { %140 = vmatpush.msra.mxu3 %v70_v24  ;;  %95 = vmatpush.msra.mxu1 %v70_v24 }
  0x1a   :  { %126 = vmatpush.msra.mxu2 %v25_v21  ;;  %54 = vmatpush.msra.mxu0 %v25_v21 }
  0x1b   :  { %141 = vmatpush.msra.mxu3 %v69_v26  ;;  %96 = vmatpush.msra.mxu1 %v69_v26 }
  0x1c   :  { %127 = vmatpush.msra.mxu2 %v24_v23  ;;  %55 = vmatpush.msra.mxu0 %v24_v23 }
  0x1d   :  { %142 = vmatpush.msra.mxu3 %v68_v30  ;;  %97 = vmatpush.msra.mxu1 %v68_v30 }
  0x1e   :  { %128 = vmatpush.msra.mxu2 %v23_v25  ;;  %56 = vmatpush.msra.mxu0 %v23_v25 }
  0x1f   :  { %143 = vmatpush.msra.mxu3 %v67_v31  ;;  %98 = vmatpush.msra.mxu1 %v67_v31 }
  0x20   :  { %129 = vmatpush.msra.mxu2 %v22_v27  ;;  %57 = vmatpush.msra.mxu0 %v22_v27 }
  0x21   :  { %61 = vmatmul.f32.vlgmr.msra.gmra.mxu2 %v21_v28  ;;  %58 = vmatmul.f32.vlgmr.msra.gmra.mxu0 %v20_v29 }
  0x22   :  { %144 = vmatpush.msra.mxu3 %v66_v32  ;;  %99 = vmatpush.msra.mxu1 %v66_v32 }
  0x24   :  { %145 = vmatpush.msra.mxu3 %v65_v33  ;;  %100 = vmatpush.msra.mxu1 %v65_v33 }
  0x9e   :  { %v59_v35 = vpop.f32.mrf.mxu0 }
  0x9f   :  { %v60_v36 = vadd.f32 %v146_v34, %v59_v35 }
  0xa1   :  { %101 = vmatmul.f32.vlgmr.msra.gmra.mxu1 %v60_v36 }
  0xa4   :  { %v62_v37 = vpop.f32.mrf.mxu2 }
  0xa5   :  { %v63_v38 = vadd.f32 %v146_v34, %v62_v37 }
  0xa7   :  { %104 = vmatmul.f32.vlgmr.msra.gmra.mxu3 %v63_v38 }
 0x11e   :  { %v102_v40 = vpop.f32.mrf.mxu1 }
 0x11f   :  { %v103_v41 = vadd.f32 %v147_v39, %v102_v40 }
 0x121   :  { %108 = vst [vmem:[%s297_s5] sm:$0xff] %v103_v41 }
 0x12a   :  { %v105_v42 = vpop.f32.mrf.mxu3 }
 0x12b   :  { %v106_v43 = vadd.f32 %v147_v39, %v105_v42 }
 0x12d   :  { %109 = vst [vmem:[%s297_s5 + $0x8] sm:$0xff] %v106_v43 }

// kernel: _two_linear_impl.1
= control target key start
LH: loop header
LB: loop body
LE: loop exit
PB: predicated region body
PF: predicated region fallthrough
CT: control target
= control target key end

     0   :  { %s292_s1 = inlined_call_operand.vmem [shape: f32[128,128], index: 1, kind: input, shape index: {}]   ;;  %s293_s3 = inlined_call_operand.vmem [shape: f32[128,128], index: 3, kind: input, shape index: {}]   ;;  %s294_s2 = inlined_call_operand.vmem [shape: f32[1,128], index: 2, kind: input, shape index: {}]   ;;  %s295_s0 = inlined_call_operand.vmem [shape: f32[16,128], index: 0, kind: input, shape index: {}]   ;;  %s296_s4 = inlined_call_operand.vmem [shape: f32[1,128], index: 4, kind: input, shape index: {}]   ;;  %s297_s5 = inlined_call_operand.vmem [shape: f32[16,128], index: 5, kind: output, shape index: {}]  }
   0x1   :  { %v37_v0 = vld [vmem:[%s292_s1 + $0x78] sm:$0xff]  ;;  %v36_v1 = vld [vmem:[%s292_s1 + $0x70] sm:$0xff]  ;;  %v35_v2 = vld [vmem:[%s292_s1 + $0x68] sm:$0xff] }
   0x2   :  { %114 = vmatpush.msra.mxu2 %v37_v0  ;;  %42 = vmatpush.msra.mxu0 %v37_v0  ;;  %v34_v3 = vld [vmem:[%s292_s1 + $0x60] sm:$0xff]  ;;  %v33_v4 = vld [vmem:[%s292_s1 + $0x58] sm:$0xff]  ;;  %v79_v6 = vld [vmem:[%s293_s3 + $0x70] sm:$0xff] }
   0x3   :  { %v80_v5 = vld [vmem:[%s293_s3 + $0x78] sm:$0xff]  ;;  %v32_v7 = vld [vmem:[%s292_s1 + $0x50] sm:$0xff]  ;;  %v78_v8 = vld [vmem:[%s293_s3 + $0x68] sm:$0xff] }
   0x4   :  { %115 = vmatpush.msra.mxu2 %v36_v1  ;;  %43 = vmatpush.msra.mxu0 %v36_v1  ;;  %v31_v9 = vld [vmem:[%s292_s1 + $0x48] sm:$0xff]  ;;  %v77_v10 = vld [vmem:[%s293_s3 + $0x60] sm:$0xff]  ;;  %v76_v12 = vld [vmem:[%s293_s3 + $0x58] sm:$0xff] }
   0x5   :  { %130 = vmatpush.msra.mxu3 %v80_v5  ;;  %85 = vmatpush.msra.mxu1 %v80_v5  ;;  %v30_v11 = vld [vmem:[%s292_s1 + $0x40] sm:$0xff]  ;;  %v29_v13 = vld [vmem:[%s292_s1 + $0x38] sm:$0xff]  ;;  %v75_v14 = vld [vmem:[%s293_s3 + $0x50] sm:$0xff] }
   0x6   :  { %116 = vmatpush.msra.mxu2 %v35_v2  ;;  %44 = vmatpush.msra.mxu0 %v35_v2  ;;  %v28_v15 = vld [vmem:[%s292_s1 + $0x30] sm:$0xff]  ;;  %v74_v16 = vld [vmem:[%s293_s3 + $0x48] sm:$0xff]  ;;  %v73_v18 = vld [vmem:[%s293_s3 + $0x40] sm:$0xff] }
   0x7   :  { %131 = vmatpush.msra.mxu3 %v79_v6  ;;  %86 = vmatpush.msra.mxu1 %v79_v6  ;;  %v27_v17 = vld [vmem:[%s292_s1 + $0x28] sm:$0xff]  ;;  %v26_v19 = vld [vmem:[%s292_s1 + $0x20] sm:$0xff]  ;;  %v72_v20 = vld [vmem:[%s293_s3 + $0x38] sm:$0xff] }
   0x8   :  { %117 = vmatpush.msra.mxu2 %v34_v3  ;;  %45 = vmatpush.msra.mxu0 %v34_v3  ;;  %v25_v21 = vld [vmem:[%s292_s1 + $0x18] sm:$0xff]  ;;  %v71_v22 = vld [vmem:[%s293_s3 + $0x30] sm:$0xff]  ;;  %v70_v24 = vld [vmem:[%s293_s3 + $0x28] sm:$0xff] }
   0x9   :  { %132 = vmatpush.msra.mxu3 %v78_v8  ;;  %87 = vmatpush.msra.mxu1 %v78_v8  ;;  %v24_v23 = vld [vmem:[%s292_s1 + $0x10] sm:$0xff]  ;;  %v23_v25 = vld [vmem:[%s292_s1 + $0x8] sm:$0xff]  ;;  %v69_v26 = vld [vmem:[%s293_s3 + $0x20] sm:$0xff] }
   0xa   :  { %118 = vmatpush.msra.mxu2 %v33_v4  ;;  %46 = vmatpush.msra.mxu0 %v33_v4  ;;  %v22_v27 = vld [vmem:[%s292_s1] sm:$0xff]  ;;  %v21_v28 = vld [vmem:[%s295_s0 + $0x8] sm:$0xff]  ;;  %v68_v30 = vld [vmem:[%s293_s3 + $0x18] sm:$0xff] }
   0xb   :  { %133 = vmatpush.msra.mxu3 %v77_v10  ;;  %88 = vmatpush.msra.mxu1 %v77_v10  ;;  %v20_v29 = vld [vmem:[%s295_s0] sm:$0xff]  ;;  %v67_v31 = vld [vmem:[%s293_s3 + $0x10] sm:$0xff]  ;;  %v66_v32 = vld [vmem:[%s293_s3 + $0x8] sm:$0xff] }
   0xc   :  { %119 = vmatpush.msra.mxu2 %v32_v7  ;;  %47 = vmatpush.msra.mxu0 %v32_v7  ;;  %v65_v33 = vld [vmem:[%s293_s3] sm:$0xff] }
   0xd   :  { %134 = vmatpush.msra.mxu3 %v76_v12  ;;  %89 = vmatpush.msra.mxu1 %v76_v12  ;;  %v146_v34 = vld [vmem:[%s294_s2] ss:$0 sm:$0xff] }
   0xe   :  { %120 = vmatpush.msra.mxu2 %v31_v9  ;;  %48 = vmatpush.msra.mxu0 %v31_v9  ;;  %v147_v39 = vld [vmem:[%s296_s4] ss:$0 sm:$0xff] }
   0xf   :  { %135 = vmatpush.msra.mxu3 %v75_v14  ;;  %90 = vmatpush.msra.mxu1 %v75_v14 }
  0x10   :  { %121 = vmatpush.msra.mxu2 %v30_v11  ;;  %49 = vmatpush.msra.mxu0 %v30_v11 }
  0x11   :  { %136 = vmatpush.msra.mxu3 %v74_v16  ;;  %91 = vmatpush.msra.mxu1 %v74_v16 }
  0x12   :  { %122 = vmatpush.msra.mxu2 %v29_v13  ;;  %50 = vmatpush.msra.mxu0 %v29_v13 }
  0x13   :  { %137 = vmatpush.msra.mxu3 %v73_v18  ;;  %92 = vmatpush.msra.mxu1 %v73_v18 }
  0x14   :  { %123 = vmatpush.msra.mxu2 %v28_v15  ;;  %51 = vmatpush.msra.mxu0 %v28_v15 }
  0x15   :  { %138 = vmatpush.msra.mxu3 %v72_v20  ;;  %93 = vmatpush.msra.mxu1 %v72_v20 }
  0x16   :  { %124 = vmatpush.msra.mxu2 %v27_v17  ;;  %52 = vmatpush.msra.mxu0 %v27_v17 }
  0x17   :  { %139 = vmatpush.msra.mxu3 %v71_v22  ;;  %94 = vmatpush.msra.mxu1 %v71_v22 }
  0x18   :  { %125 = vmatpush.msra.mxu2 %v26_v19  ;;  %53 = vmatpush.msra.mxu0 %v26_v19 }
  0x19   :  { %140 = vmatpush.msra.mxu3 %v70_v24  ;;  %95 = vmatpush.msra.mxu1 %v70_v24 }
  0x1a   :  { %126 = vmatpush.msra.mxu2 %v25_v21  ;;  %54 = vmatpush.msra.mxu0 %v25_v21 }
  0x1b   :  { %141 = vmatpush.msra.mxu3 %v69_v26  ;;  %96 = vmatpush.msra.mxu1 %v69_v26 }
  0x1c   :  { %127 = vmatpush.msra.mxu2 %v24_v23  ;;  %55 = vmatpush.msra.mxu0 %v24_v23 }
  0x1d   :  { %142 = vmatpush.msra.mxu3 %v68_v30  ;;  %97 = vmatpush.msra.mxu1 %v68_v30 }
  0x1e   :  { %128 = vmatpush.msra.mxu2 %v23_v25  ;;  %56 = vmatpush.msra.mxu0 %v23_v25 }
  0x1f   :  { %143 = vmatpush.msra.mxu3 %v67_v31  ;;  %98 = vmatpush.msra.mxu1 %v67_v31 }
  0x20   :  { %129 = vmatpush.msra.mxu2 %v22_v27  ;;  %57 = vmatpush.msra.mxu0 %v22_v27 }
  0x21   :  { %61 = vmatmul.f32.vlgmr.msra.gmra.mxu2 %v21_v28  ;;  %58 = vmatmul.f32.vlgmr.msra.gmra.mxu0 %v20_v29 }
  0x22   :  { %144 = vmatpush.msra.mxu3 %v66_v32  ;;  %99 = vmatpush.msra.mxu1 %v66_v32 }
  0x24   :  { %145 = vmatpush.msra.mxu3 %v65_v33  ;;  %100 = vmatpush.msra.mxu1 %v65_v33 }
  0x9e   :  { %v59_v35 = vpop.f32.mrf.mxu0 }
  0x9f   :  { %v60_v36 = vadd.f32 %v146_v34, %v59_v35 }
  0xa1   :  { %101 = vmatmul.f32.vlgmr.msra.gmra.mxu1 %v60_v36 }
  0xa4   :  { %v62_v37 = vpop.f32.mrf.mxu2 }
  0xa5   :  { %v63_v38 = vadd.f32 %v146_v34, %v62_v37 }
  0xa7   :  { %104 = vmatmul.f32.vlgmr.msra.gmra.mxu3 %v63_v38 }
 0x11e   :  { %v102_v40 = vpop.f32.mrf.mxu1 }
 0x11f   :  { %v103_v41 = vadd.f32 %v147_v39, %v102_v40 }
 0x121   :  { %108 = vst [vmem:[%s297_s5] sm:$0xff] %v103_v41 }
 0x12a   :  { %v105_v42 = vpop.f32.mrf.mxu3 }
 0x12b   :  { %v106_v43 = vadd.f32 %v147_v39, %v105_v42 }
 0x12d   :  { %109 = vst [vmem:[%s297_s5 + $0x8] sm:$0xff] %v106_v43 }

</bundles_post_ra>
